<compile_context>
chip_gen: v7x
topology: tpu7x:2x2x1
jax: 0.10.0
libtpu: 0.0.40
codegen_flags: <defaults>
</compile_context>

<pallas_src>
import jax
import jax.numpy as jnp
from jax.experimental import pallas as pl
from jax.experimental.pallas import tpu as pltpu


_LANES = 512           # lane width of one batch row (multiple of 128)
_MAX_TILE_ROWS = 2048  # rows per grid step -> 2*2048*512*4 B = 8 MiB input/step


def _round_up(n, m):
    return (n + m - 1) // m * m


def _choose_tile_rows(n_rows):
    """Rows per block: multiple of 8, multi-MiB steps, and >= 2 grid blocks
    whenever there is enough work so both v7x TensorCores get a share."""
    if n_rows > _MAX_TILE_ROWS:
        return _MAX_TILE_ROWS
    if n_rows >= 16:
        return _round_up(-(-n_rows // 2), 8)   # split into ~2 blocks
    return _round_up(n_rows, 8)


def _net_kernel(w_ref, b_ref, x_ref, o_ref):
    # w_ref: SMEM (2,) f32     b_ref: SMEM (1,) f32
    # x_ref: VMEM (2, TR, L)   features-first, batch dense on sublanes x lanes
    # o_ref: VMEM (TR, L)      dense output tile (unmasked lane-dense stores)
    w0 = w_ref[0]
    w1 = w_ref[1]
    b = b_ref[0]
    z = x_ref[0] * w0 + x_ref[1] * w1 + b            # (TR, L) VPU FMAs, no MXU
    # Exact sigmoid: exp on the EUP + exact divide.  The kernel is HBM-bound,
    # so the exact path costs nothing (the approx reciprocal broke tolerance).
    o_ref[...] = (1.0 / (1.0 + jnp.exp(-z))).astype(o_ref.dtype)


def net_forward_features_first(xt, weight, bias, *, out_dtype=jnp.float32):
    """Core path. xt: (2, B) f32 features-first; returns (B,) = sigmoid(w.x+b).

    Padded tail batch entries (when B is not a multiple of the tile volume)
    just compute sigmoid(bias) and are sliced off — no masking needed.
    `out_dtype=jnp.bfloat16` is available if the consumer tolerates it
    (drops HBM traffic 12 -> 10 B/element)."""
    in_f, B = xt.shape
    assert in_f == 2

    n_rows = -(-B // _LANES)                  # rows of _LANES batch elements
    tr = _choose_tile_rows(n_rows)
    rows_pad = _round_up(n_rows, tr)
    b_pad = rows_pad * _LANES

    if b_pad != B:
        xt = jnp.pad(xt, ((0, 0), (0, b_pad - B)))   # fuses with caller's .T
    xr = xt.reshape(in_f, rows_pad, _LANES)          # free row-major reshape

    w_flat = weight.reshape(in_f).astype(jnp.float32)   # (2,) from torch (1,2)
    b_flat = bias.reshape(1).astype(jnp.float32)        # (1,)

    out = pl.pallas_call(
        _net_kernel,
        out_shape=jax.ShapeDtypeStruct((rows_pad, _LANES), out_dtype),
        grid_spec=pltpu.PrefetchScalarGridSpec(
            num_scalar_prefetch=0,
            grid=(rows_pad // tr,),
            in_specs=[
                pl.BlockSpec(memory_space=pltpu.MemorySpace.SMEM),  # weight (2,)
                pl.BlockSpec(memory_space=pltpu.MemorySpace.SMEM),  # bias   (1,)
                pl.BlockSpec((in_f, tr, _LANES), lambda i: (0, i, 0)),
            ],
            out_specs=pl.BlockSpec((tr, _LANES), lambda i: (i, 0)),
        ),
        compiler_params=pltpu.CompilerParams(
            dimension_semantics=("parallel",),      # megacore-shard batch rows
            vmem_limit_bytes=48 * 1024 * 1024,      # 2x(8+4) MiB double-buffer
        ),
    )(w_flat, b_flat, xr)

    return out.reshape(b_pad)[:B]


def net_forward(x, weight, bias, *, out_dtype=jnp.float32):
    """PyTorch-interface wrapper.  x: (B, 2) f32; weight: (1, 2); bias: (1,).
    Returns (B, 1).  The transpose + tail-pad fuse into one XLA copy; callers
    that can keep activations features-first should use
    net_forward_features_first directly and skip even that."""
    B, in_f = x.shape
    out_f, _ = weight.shape
    assert in_f == 2 and out_f == 1
    y = net_forward_features_first(x.T, weight, bias, out_dtype=out_dtype)
    return y.reshape(B, out_f)


def _reference(x, weight, bias):
    return jax.nn.sigmoid(x @ weight.T + bias)


if __name__ == "__main__":
    key = jax.random.PRNGKey(0)
    k_x, k_w, k_b, k_x2 = jax.random.split(key, 4)

    B, IN_F, OUT_F = 8, 2, 1

    # Deterministic init mimicking PyTorch nn.Linear default:
    # U(-1/sqrt(fan_in), 1/sqrt(fan_in)) with fan_in = 2.
    bound = 1.0 / jnp.sqrt(jnp.float32(IN_F))
    weight = jax.random.uniform(k_w, (OUT_F, IN_F), jnp.float32, -bound, bound)
    bias = jax.random.uniform(k_b, (OUT_F,), jnp.float32, -bound, bound)

    x = jax.random.normal(k_x, (B, IN_F), jnp.float32)

    out = net_forward(x, weight, bias)
    jax.block_until_ready(out)

    ref = _reference(x, weight, bias)
    assert out.shape == (B, OUT_F), out.shape
    assert jnp.allclose(out, ref, atol=1e-5, rtol=1e-5), (out, ref)

    # Second (still small) check: exercises the padded tail + multi-row path.
    B2 = 600
    x2 = jax.random.normal(k_x2, (B2, IN_F), jnp.float32)
    out2 = net_forward(x2, weight, bias)
    jax.block_until_ready(out2)
    ref2 = _reference(x2, weight, bias)
    assert out2.shape == (B2, OUT_F), out2.shape
    assert jnp.allclose(out2, ref2, atol=1e-5, rtol=1e-5)

    print("KERNEL_OK")
</pallas_src>

<mosaic_0001>
module attributes {stable_mosaic.version = 11 : i64} {
  func.func @_net_kernel(%arg0: i32, %arg1: memref<2xf32, #tpu.memory_space<smem>>, %arg2: memref<1xf32, #tpu.memory_space<smem>>, %arg3: memref<2x8x512xf32, #tpu.memory_space<vmem>>, %arg4: memref<8x512xf32, #tpu.memory_space<vmem>>) attributes {dimension_semantics = [#tpu.dimension_semantics<parallel>], iteration_bounds = array<i64: 1>, scalar_prefetch = 0 : i64, scratch_operands = 0 : i64, tpu.core_type = #tpu.core_type<tc>, window_params = [{transform_indices = @transform_0, window_bounds = array<i64: 2>}, {transform_indices = @transform_1, window_bounds = array<i64: 1>}, {transform_indices = @transform_2, window_bounds = array<i64: 2, 8, 512>}, {transform_indices = @transform_3, window_bounds = array<i64: 8, 512>}]} {
    %c0 = arith.constant 0 : index
    %0 = memref.load %arg1[%c0] : memref<2xf32, #tpu.memory_space<smem>>
    %c1 = arith.constant 1 : index
    %1 = memref.load %arg1[%c1] : memref<2xf32, #tpu.memory_space<smem>>
    %c0_0 = arith.constant 0 : index
    %2 = memref.load %arg2[%c0_0] : memref<1xf32, #tpu.memory_space<smem>>
    %c0_1 = arith.constant 0 : index
    %c0_2 = arith.constant 0 : index
    %c0_3 = arith.constant 0 : index
    %3 = vector.load %arg3[%c0_1, %c0_2, %c0_3] : memref<2x8x512xf32, #tpu.memory_space<vmem>>, vector<1x8x512xf32>
    %4 = vector.shape_cast %3 : vector<1x8x512xf32> to vector<8x512xf32>
    %5 = vector.broadcast %0 : f32 to vector<8x512xf32>
    %6 = arith.mulf %4, %5 : vector<8x512xf32>
    %c1_4 = arith.constant 1 : index
    %c0_5 = arith.constant 0 : index
    %c0_6 = arith.constant 0 : index
    %7 = vector.load %arg3[%c1_4, %c0_5, %c0_6] : memref<2x8x512xf32, #tpu.memory_space<vmem>>, vector<1x8x512xf32>
    %8 = vector.shape_cast %7 : vector<1x8x512xf32> to vector<8x512xf32>
    %9 = vector.broadcast %1 : f32 to vector<8x512xf32>
    %10 = arith.mulf %8, %9 : vector<8x512xf32>
    %11 = arith.addf %6, %10 : vector<8x512xf32>
    %12 = vector.broadcast %2 : f32 to vector<8x512xf32>
    %13 = arith.addf %11, %12 : vector<8x512xf32>
    %cst = arith.constant 0.000000e+00 : f32
    %14 = vector.broadcast %cst : f32 to vector<8x512xf32>
    %15 = arith.subf %14, %13 : vector<8x512xf32>
    %16 = math.exp %15 : vector<8x512xf32>
    %cst_7 = arith.constant 1.000000e+00 : f32
    %17 = vector.broadcast %cst_7 : f32 to vector<8x512xf32>
    %18 = arith.addf %17, %16 : vector<8x512xf32>
    %cst_8 = arith.constant 1.000000e+00 : f32
    %19 = vector.broadcast %cst_8 : f32 to vector<8x512xf32>
    %20 = arith.divf %19, %18 : vector<8x512xf32>
    %c0_9 = arith.constant 0 : index
    %c0_10 = arith.constant 0 : index
    %21 = vector.load %arg4[%c0_9, %c0_10] : memref<8x512xf32, #tpu.memory_space<vmem>>, vector<8x512xf32>
    tpu.vector_store %arg4[%c0_9, %c0_10], %20 {strides = array<i32>} : memref<8x512xf32, #tpu.memory_space<vmem>>, vector<8x512xf32>,
    return
  }
  func.func @transform_0(%arg0: i32) -> i32 {
    %c0_i32 = arith.constant 0 : i32
    %c0_i32_0 = arith.constant 0 : i32
    return %c0_i32 : i32
  }
  func.func @transform_1(%arg0: i32) -> i32 {
    %c0_i32 = arith.constant 0 : i32
    %c0_i32_0 = arith.constant 0 : i32
    return %c0_i32 : i32
  }
  func.func @transform_2(%arg0: i32) -> (i32, i32, i32) {
    %c0_i32 = arith.constant 0 : i32
    %c0_i32_0 = arith.constant 0 : i32
    %c0_i32_1 = arith.constant 0 : i32
    return %c0_i32, %arg0, %c0_i32_0 : i32, i32, i32
  }
  func.func @transform_3(%arg0: i32) -> (i32, i32) {
    %c0_i32 = arith.constant 0 : i32
    %c0_i32_0 = arith.constant 0 : i32
    return %arg0, %c0_i32 : i32, i32
  }
}

</mosaic_0001>

<bundles_post_ra>
// kernel: tpu_custom_call.1
= control target key start
LH: loop header
LB: loop body
LE: loop exit
PB: predicated region body
PF: predicated region fallthrough
CT: control target
= control target key end

     0   :  { %9 = vsyncpa [#allocation6], 0  ;;  %s257_s0 = inlined_call_operand.vmem [shape: f32[2], index: 0, kind: input, shape index: {}]   ;;  %s258_s1 = inlined_call_operand.<no memory space> [shape: f32[1], index: 1, kind: input, shape index: {}]   ;;  %s259_s2 = inlined_call_operand.hbm [shape: f32[2,8,512], index: 2, kind: input, shape index: {}]   ;;  %s260_s3 = inlined_call_operand.hbm [shape: f32[8,512], index: 3, kind: output, shape index: {}]  }
   0x1   :  { %10 = vsyncpa [#allocation4], 0 }
   0x2   :  { %11 = vsyncpa [#allocation5], 0  ;;  %s18_s14 = sshll.u32 %s257_s0, 4  ;;  %s19_s14 = int_to_ptr.vmem [resolvable:$true] %s18_s14 }
   0x3   :  { %s140_s15 = scalar_lea.vmem %s19_s14, 16  ;;  %p145_p1 = scmp.lt.s32.totalorder %s19_s14, %s19_s14 }
   0x4   :  { %p141_p0 = scmp.ne.s32.totalorder %s19_s14, %s140_s15  ;;  %p146_p2 = scmp.lt.s32.totalorder %s140_s15, %s140_s15 }
   0x6   :  { %p147_p3 = por %p146_p2, %p145_p1 }
   0x8   :  { %p148_p4 = pnand %p147_p3, %p141_p0 }
   0xa   :  { %151 = shalt.err (!%p148_p4)
}
   0xb   :  { %s202_s16 = smov [#allocation3]   ;;  %s203_s17 = smov [#allocation7]  }
   0xc   :  { %21 = dma.vmem_to_smem %s19_s14, 16, %s202_s16, [#allocation6]  }
   0xd   :  { %s29_s18 = sshll.u32 %s203_s17, 4  ;;  %s152_s21 = scalar_lea.hbm %s259_s2, 1024  ;;  %s30_s18 = int_to_ptr.vmem [resolvable:$true] %s29_s18 }
   0xe   :  { %p153_p5 = scmp.ne.s32.totalorder %s259_s2, %s152_s21  ;;  %p156_p6 = scmp.lt.u32.totalorder %s152_s21, %s259_s2 }
  0x10   :  { %p158_p7 = pnand %p156_p6, %p153_p5 }
  0x12   :  { %161 = shalt.err (!%p158_p7)
}
  0x13   :  { %s162_s25 = scalar_lea.vmem %s30_s18, 1024  ;;  %p167_p9 = scmp.lt.s32.totalorder %s30_s18, %s30_s18 }
  0x14   :  { %p163_p8 = scmp.ne.s32.totalorder %s30_s18, %s162_s25  ;;  %p168_p10 = scmp.lt.s32.totalorder %s162_s25, %s162_s25 }
  0x16   :  { %p169_p11 = por %p168_p10, %p167_p9 }
  0x18   :  { %p170_p12 = pnand %p169_p11, %p163_p8 }
  0x1a   :  { %173 = shalt.err (!%p170_p12)
}
  0x1b   :  { %s204_s26 = smov 512   ;;  %s205_s27 = smov 32  }
  0x1c   :  { %35 = dma.hbm_to_vmem [thread:$0]  %s259_s2, 1024, %s30_s18, [#allocation4], %s204_s26, %s204_s26, %s205_s27  }
  0x1d   :  { %196 = dma.done.wait [#allocation6], 16  }
  0x1e   :  { %197 = vsyncadd [#allocation6], 4294967280 }
  0x1f   :  { %198 = dma.done.wait [#allocation4], 1024  }
  0x20   :  { %199 = vsyncadd [#allocation4], 4294966272 }
  0x21   :  { %42 = sfence }
  0x22   :  { %s43_s30 = sld [smem:[#allocation3]]  ;;  %s118_s4 = sld [smem:[#allocation3 + $0x1]]  ;;  %v46_v0 = vld [vmem:[#allocation7] sm:$0xff]  ;;  %v47_v2 = vld [vmem:[#allocation7 + $0x8] sm:$0xff]  ;;  %v48_v4 = vld [vmem:[#allocation7 + $0x10] sm:$0xff]  ;;  %v69_v10 = vstv %s258_s1 }
  0x23   :  { %v56_v1 = vld [vmem:[#allocation7 + $0x20] sm:$0xff]  ;;  %v57_v3 = vld [vmem:[#allocation7 + $0x28] sm:$0xff]  ;;  %v58_v5 = vld [vmem:[#allocation7 + $0x30] sm:$0xff]  ;;  %s206_s1 = smov [#allocation8]  }
  0x24   :  { %v49_v6 = vld [vmem:[#allocation7 + $0x18] sm:$0xff]  ;;  %s108_s2 = sshll.u32 %s206_s1, 4  ;;  %s109_s2 = int_to_ptr.vmem [resolvable:$true] %s108_s2 }
  0x25   :  { %v59_v7 = vld [vmem:[#allocation7 + $0x38] sm:$0xff]  ;;  %s174_s7 = scalar_lea.vmem %s109_s2, 512  ;;  %p179_p0 = scmp.lt.s32.totalorder %s109_s2, %s109_s2 }
  0x26   :  { %p175_p13 = scmp.ne.s32.totalorder %s109_s2, %s174_s7  ;;  %p180_p1 = scmp.lt.s32.totalorder %s174_s7, %s174_s7 }
  0x28   :  { %v50_v8 = vstv %s43_s30  ;;  %v60_v9 = vstv %s118_s4  ;;  %p181_p2 = por %p180_p1, %p179_p0 }
  0x29   :  { %v51_v11 = vmul.f32 %v50_v8, %v46_v0  ;;  %v61_v12 = vmul.f32 %v60_v9, %v56_v1  ;;  %v52_v13 = vmul.f32 %v50_v8, %v47_v2  ;;  %v62_v14 = vmul.f32 %v60_v9, %v57_v3 }
  0x2a   :  { %v53_v15 = vmul.f32 %v50_v8, %v48_v4  ;;  %v63_v16 = vmul.f32 %v60_v9, %v58_v5  ;;  %v54_v17 = vmul.f32 %v50_v8, %v49_v6  ;;  %v64_v18 = vmul.f32 %v60_v9, %v59_v7  ;;  %p182_p3 = pnand %p181_p2, %p175_p13 }
  0x2b   :  { %v65_v19 = vadd.f32 %v61_v12, %v51_v11  ;;  %v66_v20 = vadd.f32 %v62_v14, %v52_v13 }
  0x2c   :  { %v67_v21 = vadd.f32 %v63_v16, %v53_v15  ;;  %v68_v22 = vadd.f32 %v64_v18, %v54_v17 }
  0x2d   :  { %v70_v23 = vadd.f32 %v69_v10, %v65_v19  ;;  %v71_v24 = vadd.f32 %v69_v10, %v66_v20 }
  0x2e   :  { %v72_v25 = vadd.f32 %v69_v10, %v67_v21  ;;  %v73_v26 = vadd.f32 %v69_v10, %v68_v22 }
  0x2f   :  { %v74_v27 = vsub.f32 0.0, %v70_v23  ;;  %v75_v28 = vsub.f32 0.0, %v71_v24 }
  0x30   :  { %v76_v29 = vsub.f32 0.0, %v72_v25  ;;  %v77_v30 = vsub.f32 0.0, %v73_v26 }
  0x31   :  { %v78_v31 = vmul.f32 1.442695, %v74_v27  ;;  %v80_v32 = vmul.f32 1.442695, %v75_v28 }
  0x32   :  { %v82_v33 = vmul.f32 1.442695, %v76_v29  ;;  %v84_v34 = vmul.f32 1.442695, %v77_v30 }
  0x33   :  { %124 = vpow2.f32 %v78_v31 }
  0x34   :  { %126 = vpow2.f32 %v80_v32 }
  0x35   :  { %128 = vpow2.f32 %v82_v33 }
  0x36   :  { %130 = vpow2.f32 %v84_v34 }
  0x3d   :  { %v125_v35 = vpop.eup %124 }
  0x3e   :  { %v127_v36 = vpop.eup %126  ;;  %v86_v37 = vadd.f32 1.0, %v125_v35 }
  0x3f   :  { %v129_v38 = vpop.eup %128  ;;  %v87_v39 = vadd.f32 1.0, %v127_v36 }
  0x40   :  { %v131_v40 = vpop.eup %130  ;;  %132 = vrcp.f32 %v86_v37  ;;  %v88_v41 = vadd.f32 1.0, %v129_v38 }
  0x41   :  { %134 = vrcp.f32 %v87_v39  ;;  %v89_v42 = vadd.f32 1.0, %v131_v40 }
  0x42   :  { %136 = vrcp.f32 %v88_v41 }
  0x43   :  { %138 = vrcp.f32 %v89_v42 }
  0x4a   :  { %v133_v43 = vpop.eup %132 }
  0x4b   :  { %v135_v44 = vpop.eup %134  ;;  %98 = vst [vmem:[#allocation8] sm:$0xff] %v133_v43 }
  0x4c   :  { %v137_v45 = vpop.eup %136  ;;  %99 = vst [vmem:[#allocation8 + $0x8] sm:$0xff] %v135_v44 }
  0x4d   :  { %v139_v46 = vpop.eup %138  ;;  %100 = vst [vmem:[#allocation8 + $0x10] sm:$0xff] %v137_v45 }
  0x4e   :  { %101 = vst [vmem:[#allocation8 + $0x18] sm:$0xff] %v139_v46 }
  0x4f   :  { %185 = shalt.err (!%p182_p3)
}
  0x50   :  { %s186_s10 = scalar_lea.hbm %s260_s3, 512 }
  0x51   :  { %p187_p4 = scmp.ne.s32.totalorder %s260_s3, %s186_s10  ;;  %p190_p5 = scmp.lt.u32.totalorder %s186_s10, %s260_s3 }
  0x53   :  { %p192_p6 = pnand %p190_p5, %p187_p4 }
  0x55   :  { %195 = shalt.err (!%p192_p6)
}
  0x56   :  { %111 = dma.vmem_to_hbm [thread:$0]  %s109_s2, 512, %s260_s3, [#allocation5]  }
  0x57   :  { %200 = dma.done.wait [#allocation5], 512  }
  0x58   :  { %201 = vsyncadd [#allocation5], 4294966784 }
  0x59   :  { %115 = vsyncpa [#allocation4], 1 }
  0x5a   :  { %116 = vsyncpa [#allocation5], 1 }
  0x5b   :  { %117 = vsyncpa [#allocation6], 1 }

</bundles_post_ra>
